<compile_context>
chip_gen: v7x
topology: tpu7x:2x2x1
jax: 0.10.0
libtpu: 0.0.40
codegen_flags: <defaults>
</compile_context>

<pallas_src>
from functools import partial

import jax
import jax.numpy as jnp
from jax.experimental import pallas as pl
from jax.experimental.pallas import tpu as pltpu


# Tile sizes: 256-multiples feed the v6e/v7x 2x256x256 MXU at native width and
# cut per-grid-step overhead / re-streaming vs 128-wide tiles.  Double-buffered
# working set at (256, 256, 512) bf16 is ~2 MiB -> far under every chip's
# scoped-VMEM default (16 MiB on v5e, 32 MiB on v6e/v7x), so no explicit
# vmem_limit_bytes is needed.
_TM, _TN, _TK = 256, 256, 512
_PALLAS_MIN_FEATURE = 128   # tiny heads: XLA's fused dot beats any Pallas launch
_MIN_PALLAS_ROWS = 64       # tiny batches: padding to _TM rows wastes 4-32x MXU work


def _round_up(x, m):
    return (x + m - 1) // m * m


# ----------------------------- Pallas kernel -----------------------------

def _grouped_linear_kernel(gid_ref, x_ref, w_ref, b_ref, o_ref):
    """One (tm, tn) f32 output tile; K is the trailing 'arbitrary' grid axis.

    The output tile's block index (i, j) is constant across k, so it stays
    resident in VMEM and is used directly as the accumulator (no scratch, no
    final acc->out copy; fewer vector stores, which matters most on v5e).
    """
    k = pl.program_id(2)

    @pl.when(k == 0)
    def _():
        o_ref[...] = jnp.zeros_like(o_ref)

    o_ref[...] += jnp.dot(x_ref[...], w_ref[...],
                          preferred_element_type=jnp.float32)

    @pl.when(k == pl.num_programs(2) - 1)
    def _():
        o_ref[...] += b_ref[...]          # (1, tn) f32 bias broadcast over (tm, tn)


def grouped_linear(x, w_stack, b_stack, block_group_ids, *, tm=_TM, tn=_TN, tk=_TK):
    """y[i*tm:(i+1)*tm, :] = x_tile @ w_stack[gid[i]] + b_stack[gid[i]].

    x:               (M, K)    bf16 activations, M % tm == 0, K % tk == 0
    w_stack:         (G, K, N) bf16 per-group weights, N % tn == 0
    b_stack:         (G, 1, N) f32 per-group biases
    block_group_ids: (M//tm,)  int32 group index per M tile (scalar-prefetched)
    """
    M, K = x.shape
    G, Kw, N = w_stack.shape
    assert Kw == K and M % tm == 0 and K % tk == 0 and N % tn == 0
    assert block_group_ids.shape == (M // tm,)

    grid = (M // tm, N // tn, K // tk)

    return pl.pallas_call(
        _grouped_linear_kernel,
        out_shape=jax.ShapeDtypeStruct((M, N), jnp.float32),
        grid_spec=pltpu.PrefetchScalarGridSpec(
            num_scalar_prefetch=1,
            grid=grid,
            in_specs=[
                pl.BlockSpec((tm, tk), lambda i, j, k, gids: (i, k)),
                # group dim squeezed; scalar-prefetched gid picks the weight slab
                pl.BlockSpec((None, tk, tn), lambda i, j, k, gids: (gids[i], k, j)),
                pl.BlockSpec((None, 1, tn), lambda i, j, k, gids: (gids[i], 0, j)),
            ],
            out_specs=pl.BlockSpec((tm, tn), lambda i, j, k, gids: (i, j)),
        ),
        compiler_params=pltpu.CompilerParams(
            dimension_semantics=("parallel", "parallel", "arbitrary")),
    )(block_group_ids, x, w_stack, b_stack)


# -------------------- jitted wrappers around the kernel -------------------
# Padding / concat / slicing all live under jit so XLA fuses them with the
# surrounding program instead of materializing extra HBM copies per call.

@partial(jax.jit, static_argnames=("tm", "tn", "tk", "d_out"))
def _forward_one(x, gi, w_stack, b_stack, *, tm, tn, tk, d_out):
    M, d_in = x.shape
    Kp = w_stack.shape[1]
    Mp = _round_up(max(M, tm), tm)
    xp = jnp.pad(x.astype(jnp.bfloat16), ((0, Mp - M), (0, Kp - d_in)))
    gids = jnp.broadcast_to(jnp.asarray(gi, dtype=jnp.int32), (Mp // tm,))
    y = grouped_linear(xp, w_stack, b_stack, gids, tm=tm, tn=tn, tk=tk)
    return y[:M, :d_out]


@partial(jax.jit, static_argnames=("tm", "tn", "tk", "d_out"))
def _forward_fused(xs, task_gids, w_stack, b_stack, *, tm, tn, tk, d_out):
    Kp = w_stack.shape[1]
    padded, blocks = [], []
    for idx, x in enumerate(xs):
        M, d_in = x.shape
        Mp = _round_up(max(M, tm), tm)
        padded.append(jnp.pad(x.astype(jnp.bfloat16), ((0, Mp - M), (0, Kp - d_in))))
        blocks.append(jnp.broadcast_to(task_gids[idx], (Mp // tm,)).astype(jnp.int32))
    X = jnp.concatenate(padded, axis=0)
    gids = jnp.concatenate(blocks, axis=0)
    Y = grouped_linear(X, w_stack, b_stack, gids, tm=tm, tn=tn, tk=tk)
    outs, off = [], 0
    for x in xs:
        M = x.shape[0]
        outs.append(Y[off:off + M, :d_out])
        off += _round_up(max(M, tm), tm)
    return tuple(outs)


@jax.jit
def _xla_linear(x, w, b):
    # Small-head / small-batch fallback: a fused XLA dot beats a Pallas launch.
    return x @ w + b


# --------------------------- Module equivalent ---------------------------

class PerTaskGroupWrapper:
    """JAX equivalent of the PyTorch PerTaskGroupWrapper.

    task_groups: list of tuples of task names.
    create_module_func(group) -> {"w": (D_in, D_out), "b": (1, D_out)}.
    Tasks in the same group SHARE one parameter set, exactly like the PyTorch
    ModuleDict sharing one nn.Module instance per group.  Group weights are
    additionally stacked into one bf16 slab (cast ONCE here, not per call) so
    a single grouped Pallas kernel serves every task group.
    """

    def __init__(self, task_groups, create_module_func):
        self.task_groups = [tuple(g) for g in task_groups]
        self.task_to_group = {}
        self.group_params = []
        for gi, g in enumerate(self.task_groups):
            params = create_module_func(g)        # one shared param set per group
            self.group_params.append(params)
            for t in g:
                self.task_to_group[t] = gi
        # parity with torch ModuleDict: task -> shared params object
        self.per_task_mod = {t: self.group_params[gi]
                             for t, gi in self.task_to_group.items()}

        self.d_in = self.group_params[0]["w"].shape[0]
        self.d_out = self.group_params[0]["w"].shape[1]
        self.use_pallas = max(self.d_in, self.d_out) >= _PALLAS_MIN_FEATURE

        # Feature-axis tiles / padding chosen once, lane-dense 128-multiples
        # (256-multiples whenever the head is big enough, for v6e/v7x MXU width).
        self.tm = _TM
        self.tk = min(_TK, _round_up(max(self.d_in, 128), 128))
        self.tn = min(_TN, _round_up(max(self.d_out, 128), 128))
        self.Kp = _round_up(self.d_in, self.tk)
        self.Np = _round_up(self.d_out, self.tn)

        G = len(self.task_groups)
        w_stack = jnp.zeros((G, self.Kp, self.Np), jnp.float32)
        b_stack = jnp.zeros((G, 1, self.Np), jnp.float32)
        for gi, p in enumerate(self.group_params):
            w_stack = w_stack.at[gi, :self.d_in, :self.d_out].set(p["w"])
            b_stack = b_stack.at[gi, :, :self.d_out].set(p["b"])
        # Cast weights to bf16 ONCE (half the weight DMA bytes, MXU-native rate);
        # bias stays f32 and is added after the f32 accumulation.
        self.w_stack = w_stack.astype(jnp.bfloat16)
        self.b_stack = b_stack

    # ---- original per-task semantics ----
    def forward(self, task_name, x):
        gi = self.task_to_group[task_name]
        if not self.use_pallas or x.shape[0] < _MIN_PALLAS_ROWS:
            p = self.group_params[gi]
            return _xla_linear(x, p["w"], p["b"])
        return _forward_one(x, gi, self.w_stack, self.b_stack,
                            tm=self.tm, tn=self.tn, tk=self.tk, d_out=self.d_out)

    __call__ = forward

    # ---- fused dispatch: every (task, x) pair in ONE pallas_call ----
    def forward_grouped(self, task_batches):
        if not self.use_pallas:
            return {t: self.forward(t, x) for t, x in task_batches}
        names = [t for t, _ in task_batches]
        xs = tuple(x for _, x in task_batches)
        task_gids = jnp.asarray([self.task_to_group[t] for t in names], jnp.int32)
        outs = _forward_fused(xs, task_gids, self.w_stack, self.b_stack,
                              tm=self.tm, tn=self.tn, tk=self.tk, d_out=self.d_out)
        return dict(zip(names, outs))

    # TODO(synk): to_device()/get_device() are PyTorch device-placement helpers
    # with no single-kernel Pallas equivalent; in JAX use jax.device_put /
    # sharding at the program level.


# ----------------------- deterministic param setup -----------------------

def make_linear_module_factory(d_in, d_out, base_key):
    """Returns create_module_func(group) -> params dict (shared per group)."""
    def create_module_func(group):
        # Stable per-group seed (no Python hash() salting -> reproducible runs).
        seed = 0
        for i, t in enumerate(group):
            for c in t:
                seed = (seed * 131 + ord(c) + 7 * (i + 1)) % (2 ** 31)
        k = jax.random.fold_in(base_key, seed)
        kw, kb = jax.random.split(k)
        bound = 1.0 / (d_in ** 0.5)  # torch.nn.Linear default init range
        w = jax.random.uniform(kw, (d_in, d_out), jnp.float32, -bound, bound)
        b = jax.random.uniform(kb, (1, d_out), jnp.float32, -bound, bound)
        return {"w": w, "b": b}
    return create_module_func


# --------------------------------- main ----------------------------------

if __name__ == "__main__":
    key = jax.random.PRNGKey(0)
    k_in, k_params = jax.random.split(key)

    # Small, lane-dense head sizes; one batch that needs M padding (200 -> 256).
    d_in, d_out = 256, 256
    task_groups = [("taskA", "taskB"), ("taskC",)]

    wrapper = PerTaskGroupWrapper(
        task_groups, make_linear_module_factory(d_in, d_out, k_params))

    xa = jax.random.normal(k_in, (200, d_in), jnp.float32)
    xc = jax.random.normal(jax.random.fold_in(k_in, 1), (256, d_in), jnp.float32)
    x_tiny = jax.random.normal(jax.random.fold_in(k_in, 2), (8, d_in), jnp.float32)

    # Per-task forward (original module semantics).
    y_a = wrapper("taskA", xa)
    y_b = wrapper("taskB", xa)    # same group -> same shared params -> same output
    y_c = wrapper("taskC", xc)
    y_tiny = wrapper("taskA", x_tiny)   # small-batch XLA fallback path

    # Fused dispatch: all tasks / all groups in ONE grouped pallas_call.
    fused = wrapper.forward_grouped([("taskA", xa), ("taskC", xc)])

    jax.block_until_ready((y_a, y_b, y_c, y_tiny, fused))

    # Reference matching the kernel's bf16-input / f32-accumulate numerics.
    def ref(x, gi):
        p = wrapper.group_params[gi]
        return jnp.dot(x.astype(jnp.bfloat16), p["w"].astype(jnp.bfloat16),
                       preferred_element_type=jnp.float32) + p["b"]

    def ref_f32(x, gi):
        p = wrapper.group_params[gi]
        return x @ p["w"] + p["b"]

    assert y_a.shape == (200, d_out) and y_c.shape == (256, d_out)
    assert jnp.allclose(y_a, ref(xa, 0), atol=2e-3, rtol=2e-3), "taskA mismatch"
    assert jnp.allclose(y_c, ref(xc, 1), atol=2e-3, rtol=2e-3), "taskC mismatch"
    assert jnp.allclose(y_a, y_b), "group sharing broken"
    assert jnp.allclose(y_tiny, ref_f32(x_tiny, 0), atol=1e-5, rtol=1e-5), \
        "tiny-batch fallback mismatch"
    assert jnp.allclose(fused["taskA"], y_a, atol=2e-3, rtol=2e-3), "fused taskA mismatch"
    assert jnp.allclose(fused["taskC"], y_c, atol=2e-3, rtol=2e-3), "fused taskC mismatch"

    print("KERNEL_OK")
</pallas_src>

<mosaic_0001>
module attributes {stable_mosaic.version = 11 : i64} {
  func.func @_grouped_linear_kernel(%arg0: i32, %arg1: i32, %arg2: i32, %arg3: memref<1xi32, #tpu.memory_space<smem>>, %arg4: memref<256x256xbf16, #tpu.memory_space<vmem>>, %arg5: memref<1x256x256xbf16, #tpu.memory_space<vmem>>, %arg6: memref<1x1x256xf32, #tpu.memory_space<vmem>>, %arg7: memref<256x256xf32, #tpu.memory_space<vmem>>) attributes {dimension_semantics = [#tpu.dimension_semantics<parallel>, #tpu.dimension_semantics<parallel>, #tpu.dimension_semantics<arbitrary>], iteration_bounds = array<i64: 1, 1, 1>, scalar_prefetch = 1 : i64, scratch_operands = 0 : i64, tpu.core_type = #tpu.core_type<tc>, window_params = [{transform_indices = @transform_0, window_bounds = array<i64: 256, 256>}, {transform_indices = @transform_1, window_bounds = array<i64: 1, 256, 256>}, {transform_indices = @transform_2, window_bounds = array<i64: 1, 1, 256>}, {transform_indices = @transform_3, window_bounds = array<i64: 256, 256>}]} {
    %c0_i32 = arith.constant 0 : i32
    %0 = arith.cmpi eq, %arg2, %c0_i32 : i32
    %1 = arith.extui %0 : i1 to i32
    %c0_i32_0 = arith.constant 0 : i32
    %2 = arith.cmpi ne, %1, %c0_i32_0 : i32
    scf.if %2 {
      %cst_11 = arith.constant 0.000000e+00 : f32
      %13 = vector.broadcast %cst_11 : f32 to vector<256x256xf32>
      %c0_12 = arith.constant 0 : index
      %c0_13 = arith.constant 0 : index
      %14 = vector.load %arg7[%c0_12, %c0_13] : memref<256x256xf32, #tpu.memory_space<vmem>>, vector<256x256xf32>
      tpu.vector_store %arg7[%c0_12, %c0_13], %13 {strides = array<i32>} : memref<256x256xf32, #tpu.memory_space<vmem>>, vector<256x256xf32>,
    } else {
    }
    %c0 = arith.constant 0 : index
    %c0_1 = arith.constant 0 : index
    %3 = vector.load %arg7[%c0, %c0_1] : memref<256x256xf32, #tpu.memory_space<vmem>>, vector<256x256xf32>
    %c0_2 = arith.constant 0 : index
    %c0_3 = arith.constant 0 : index
    %4 = vector.load %arg4[%c0_2, %c0_3] : memref<256x256xbf16, #tpu.memory_space<vmem>>, vector<256x256xbf16>
    %c0_4 = arith.constant 0 : index
    %c0_5 = arith.constant 0 : index
    %c0_6 = arith.constant 0 : index
    %5 = vector.load %arg5[%c0_4, %c0_5, %c0_6] : memref<1x256x256xbf16, #tpu.memory_space<vmem>>, vector<1x256x256xbf16>
    %6 = vector.shape_cast %5 : vector<1x256x256xbf16> to vector<256x256xbf16>
    %cst = arith.constant dense<0.000000e+00> : vector<256x256xf32>
    %7 = tpu.matmul %4, %6, %cst {dimension_numbers = #tpu.dot_dimension_numbers<[1], [0], [0], [1], [0, 0, 1, 1], [], []>} : vector<256x256xbf16>, vector<256x256xbf16>, vector<256x256xf32> -> vector<256x256xf32>
    %8 = arith.addf %3, %7 : vector<256x256xf32>
    %c0_7 = arith.constant 0 : index
    %c0_8 = arith.constant 0 : index
    %9 = vector.load %arg7[%c0_7, %c0_8] : memref<256x256xf32, #tpu.memory_space<vmem>>, vector<256x256xf32>
    tpu.vector_store %arg7[%c0_7, %c0_8], %8 {strides = array<i32>} : memref<256x256xf32, #tpu.memory_space<vmem>>, vector<256x256xf32>,
    %c0_i32_9 = arith.constant 0 : i32
    %10 = arith.cmpi eq, %arg2, %c0_i32_9 : i32
    %11 = arith.extui %10 : i1 to i32
    %c0_i32_10 = arith.constant 0 : i32
    %12 = arith.cmpi ne, %11, %c0_i32_10 : i32
    scf.if %12 {
      %c0_11 = arith.constant 0 : index
      %c0_12 = arith.constant 0 : index
      %13 = vector.load %arg7[%c0_11, %c0_12] : memref<256x256xf32, #tpu.memory_space<vmem>>, vector<256x256xf32>
      %c0_13 = arith.constant 0 : index
      %c0_14 = arith.constant 0 : index
      %c0_15 = arith.constant 0 : index
      %14 = vector.load %arg6[%c0_13, %c0_14, %c0_15] : memref<1x1x256xf32, #tpu.memory_space<vmem>>, vector<1x1x256xf32>
      %15 = vector.shape_cast %14 : vector<1x1x256xf32> to vector<1x256xf32>
      %16 = vector.broadcast %15 : vector<1x256xf32> to vector<256x256xf32>
      %17 = arith.addf %13, %16 : vector<256x256xf32>
      %c0_16 = arith.constant 0 : index
      %c0_17 = arith.constant 0 : index
      %18 = vector.load %arg7[%c0_16, %c0_17] : memref<256x256xf32, #tpu.memory_space<vmem>>, vector<256x256xf32>
      tpu.vector_store %arg7[%c0_16, %c0_17], %17 {strides = array<i32>} : memref<256x256xf32, #tpu.memory_space<vmem>>, vector<256x256xf32>,
    } else {
    }
    return
  }
  func.func @transform_0(%arg0: i32, %arg1: i32, %arg2: i32, %arg3: memref<1xi32, #tpu.memory_space<smem>>) -> (i32, i32) {
    %c0_i32 = arith.constant 0 : i32
    return %arg0, %arg2 : i32, i32
  }
  func.func @transform_1(%arg0: i32, %arg1: i32, %arg2: i32, %arg3: memref<1xi32, #tpu.memory_space<smem>>) -> (i32, i32, i32) {
    %0 = arith.index_cast %arg0 : i32 to index
    %1 = memref.load %arg3[%0] : memref<1xi32, #tpu.memory_space<smem>>
    %c0_i32 = arith.constant 0 : i32
    return %1, %arg2, %arg1 : i32, i32, i32
  }
  func.func @transform_2(%arg0: i32, %arg1: i32, %arg2: i32, %arg3: memref<1xi32, #tpu.memory_space<smem>>) -> (i32, i32, i32) {
    %0 = arith.index_cast %arg0 : i32 to index
    %1 = memref.load %arg3[%0] : memref<1xi32, #tpu.memory_space<smem>>
    %c0_i32 = arith.constant 0 : i32
    %c0_i32_0 = arith.constant 0 : i32
    return %1, %c0_i32, %arg1 : i32, i32, i32
  }
  func.func @transform_3(%arg0: i32, %arg1: i32, %arg2: i32, %arg3: memref<1xi32, #tpu.memory_space<smem>>) -> (i32, i32) {
    %c0_i32 = arith.constant 0 : i32
    return %arg0, %arg1 : i32, i32
  }
}

</mosaic_0001>

<bundles_post_ra>
// kernel: _forward_one.1
= control target key start
LH: loop header
LB: loop body
LE: loop exit
PB: predicated region body
PF: predicated region fallthrough
CT: control target
= control target key end

     0   :  { %s1741_s0 = inlined_call_operand.<no memory space> [shape: s32[1], index: 0, kind: input, shape index: {}]   ;;  %s1742_s1 = inlined_call_operand.vmem [shape: bf16[256,256], index: 1, kind: input, shape index: {}]   ;;  %s1743_s2 = inlined_call_operand.vmem [shape: bf16[2,256,256], index: 2, kind: input, shape index: {}]   ;;  %s1744_s3 = inlined_call_operand.vmem [shape: f32[2,1,256], index: 3, kind: input, shape index: {}]   ;;  %s1745_s4 = inlined_call_operand.vmem [shape: f32[256,256], index: 4, kind: output, shape index: {}]  }
   0x1   :  { %p41_p0 = scmp.lt.s32.totalorder %s1741_s0, 1  ;;  %v1264_v0 = vld [vmem:[%s1742_s1 + $0x4] ss:$8 sps:$4 sm:$0xff]   ;;  %v1262_v34 = vld [vmem:[%s1742_s1] ss:$8 sps:$4 sm:$0xff]  }
   0x2   :  { %v1267_v1 = vld [vmem:[%s1742_s1 + $0x84] ss:$8 sps:$4 sm:$0xff]   ;;  %601 = vmatprep.mubr.bf16.mxu0 %v1264_v0  ;;  %v1265_v35 = vld [vmem:[%s1742_s1 + $0x80] ss:$8 sps:$4 sm:$0xff]   ;;  %v1268_v36 = vld [vmem:[%s1742_s1 + $0x14] ss:$8 sps:$4 sm:$0xff]   ;;  %v959_v0 = vlaneseq }
   0x3   :  { %s1747_s0 = smov (!%p41_p0, %s1741_s0), 1  ;;  %681 = vmatprep.mubr.bf16.mxu1 %v1267_v1  ;;  %v1270_v37 = vld [vmem:[%s1742_s1 + $0x94] ss:$8 sps:$4 sm:$0xff]   ;;  %v1272_v38 = vld [vmem:[%s1742_s1 + $0x10] ss:$8 sps:$4 sm:$0xff]  }
   0x4   :  { %s1180_s23 = sshll.u32 %s1747_s0, 8  ;;  %v1273_v39 = vld [vmem:[%s1742_s1 + $0x90] ss:$8 sps:$4 sm:$0xff]   ;;  %v1274_v40 = vld [vmem:[%s1742_s1 + $0x24] ss:$8 sps:$4 sm:$0xff]   ;;  %s1115_s6 = sshll.u32 %s1747_s0, 1 }
   0x5   :  { %s1353_s26 = scalar_lea.vmem %s1743_s2, %s1180_s23  ;;  %v1276_v41 = vld [vmem:[%s1742_s1 + $0xa4] ss:$8 sps:$4 sm:$0xff]   ;;  %v1278_v42 = vld [vmem:[%s1742_s1 + $0x20] ss:$8 sps:$4 sm:$0xff]   ;;  %v1280_v44 = vld [vmem:[%s1742_s1 + $0x34] ss:$8 sps:$4 sm:$0xff]   ;;  %s51_s9 = scalar_lea.vmem %s1744_s3, %s1115_s6 }
   0x6   :  { %v1214_v2 = vld [vmem:[%s1353_s26 + $0x4] ss:$8 sps:$4 sm:$0xff]   ;;  %v1216_v3 = vld [vmem:[%s1353_s26] ss:$8 sps:$4 sm:$0xff]   ;;  %v1217_v4 = vld [vmem:[%s1353_s26 + $0x14] ss:$8 sps:$4 sm:$0xff]  }
   0x7   :  { %569 = vmatprep.subr.bf16.mxu0 %v1214_v2  ;;  %1181 = vmatprep.subr.bf16.mxu1 %v1214_v2  ;;  %v1219_v5 = vld [vmem:[%s1353_s26 + $0x10] ss:$8 sps:$4 sm:$0xff]   ;;  %v1220_v6 = vld [vmem:[%s1353_s26 + $0x24] ss:$8 sps:$4 sm:$0xff]   ;;  %v1222_v7 = vld [vmem:[%s1353_s26 + $0x20] ss:$8 sps:$4 sm:$0xff]  }
   0x8   :  { %570 = vmatpush1.bf16.msra.mxu0 %v1216_v3  ;;  %1197 = vmatpush1.bf16.msra.mxu1 %v1216_v3  ;;  %v1223_v8 = vld [vmem:[%s1353_s26 + $0x34] ss:$8 sps:$4 sm:$0xff]   ;;  %v1225_v9 = vld [vmem:[%s1353_s26 + $0x30] ss:$8 sps:$4 sm:$0xff]   ;;  %v1226_v10 = vld [vmem:[%s1353_s26 + $0x44] ss:$8 sps:$4 sm:$0xff]  }
   0x9   :  { %571 = vmatprep.subr.bf16.mxu0 %v1217_v4  ;;  %1182 = vmatprep.subr.bf16.mxu1 %v1217_v4  ;;  %v1228_v11 = vld [vmem:[%s1353_s26 + $0x40] ss:$8 sps:$4 sm:$0xff]   ;;  %v1229_v12 = vld [vmem:[%s1353_s26 + $0x54] ss:$8 sps:$4 sm:$0xff]   ;;  %v1231_v13 = vld [vmem:[%s1353_s26 + $0x50] ss:$8 sps:$4 sm:$0xff]  }
   0xa   :  { %v1232_v14 = vld [vmem:[%s1353_s26 + $0x64] ss:$8 sps:$4 sm:$0xff]   ;;  %v1234_v15 = vld [vmem:[%s1353_s26 + $0x60] ss:$8 sps:$4 sm:$0xff]   ;;  %v1235_v16 = vld [vmem:[%s1353_s26 + $0x74] ss:$8 sps:$4 sm:$0xff]  }
   0xb   :  { %v1237_v17 = vld [vmem:[%s1353_s26 + $0x70] ss:$8 sps:$4 sm:$0xff]   ;;  %v1238_v18 = vld [vmem:[%s1353_s26 + $0x84] ss:$8 sps:$4 sm:$0xff]   ;;  %v1240_v19 = vld [vmem:[%s1353_s26 + $0x80] ss:$8 sps:$4 sm:$0xff]  }
   0xc   :  { %572 = vmatpush1.bf16.msra.mxu0 %v1219_v5  ;;  %1198 = vmatpush1.bf16.msra.mxu1 %v1219_v5  ;;  %v1241_v20 = vld [vmem:[%s1353_s26 + $0x94] ss:$8 sps:$4 sm:$0xff]   ;;  %v1243_v21 = vld [vmem:[%s1353_s26 + $0x90] ss:$8 sps:$4 sm:$0xff]   ;;  %v1244_v22 = vld [vmem:[%s1353_s26 + $0xa4] ss:$8 sps:$4 sm:$0xff]  }
   0xd   :  { %573 = vmatprep.subr.bf16.mxu0 %v1220_v6  ;;  %1183 = vmatprep.subr.bf16.mxu1 %v1220_v6  ;;  %v1246_v23 = vld [vmem:[%s1353_s26 + $0xa0] ss:$8 sps:$4 sm:$0xff]   ;;  %v1247_v24 = vld [vmem:[%s1353_s26 + $0xb4] ss:$8 sps:$4 sm:$0xff]   ;;  %v1249_v25 = vld [vmem:[%s1353_s26 + $0xb0] ss:$8 sps:$4 sm:$0xff]  }
   0xe   :  { %v1250_v26 = vld [vmem:[%s1353_s26 + $0xc4] ss:$8 sps:$4 sm:$0xff]   ;;  %v1252_v27 = vld [vmem:[%s1353_s26 + $0xc0] ss:$8 sps:$4 sm:$0xff]   ;;  %v1253_v28 = vld [vmem:[%s1353_s26 + $0xd4] ss:$8 sps:$4 sm:$0xff]  }
   0xf   :  { %v1255_v29 = vld [vmem:[%s1353_s26 + $0xd0] ss:$8 sps:$4 sm:$0xff]   ;;  %v1256_v30 = vld [vmem:[%s1353_s26 + $0xe4] ss:$8 sps:$4 sm:$0xff]   ;;  %v1258_v31 = vld [vmem:[%s1353_s26 + $0xe0] ss:$8 sps:$4 sm:$0xff]  }
  0x10   :  { %574 = vmatpush1.bf16.msra.mxu0 %v1222_v7  ;;  %1199 = vmatpush1.bf16.msra.mxu1 %v1222_v7  ;;  %v1259_v32 = vld [vmem:[%s1353_s26 + $0xf4] ss:$8 sps:$4 sm:$0xff]   ;;  %v1261_v33 = vld [vmem:[%s1353_s26 + $0xf0] ss:$8 sps:$4 sm:$0xff]   ;;  %v1279_v43 = vld [vmem:[%s1742_s1 + $0xa0] ss:$8 sps:$4 sm:$0xff]  }
  0x11   :  { %575 = vmatprep.subr.bf16.mxu0 %v1223_v8  ;;  %1184 = vmatprep.subr.bf16.mxu1 %v1223_v8  ;;  %v1282_v45 = vld [vmem:[%s1742_s1 + $0xb4] ss:$8 sps:$4 sm:$0xff]   ;;  %v1284_v46 = vld [vmem:[%s1742_s1 + $0x30] ss:$8 sps:$4 sm:$0xff]   ;;  %v1286_v48 = vld [vmem:[%s1742_s1 + $0x44] ss:$8 sps:$4 sm:$0xff]  }
  0x12   :  { %v1285_v47 = vld [vmem:[%s1742_s1 + $0xb0] ss:$8 sps:$4 sm:$0xff]   ;;  %v1288_v49 = vld [vmem:[%s1742_s1 + $0xc4] ss:$8 sps:$4 sm:$0xff]   ;;  %v1290_v50 = vld [vmem:[%s1742_s1 + $0x40] ss:$8 sps:$4 sm:$0xff]  }
  0x13   :  { %v1291_v51 = vld [vmem:[%s1742_s1 + $0xc0] ss:$8 sps:$4 sm:$0xff]   ;;  %v1292_v52 = vld [vmem:[%s1742_s1 + $0x54] ss:$8 sps:$4 sm:$0xff]   ;;  %v1296_v54 = vld [vmem:[%s1742_s1 + $0x50] ss:$8 sps:$4 sm:$0xff]  }
  0x14   :  { %576 = vmatpush1.bf16.msra.mxu0 %v1225_v9  ;;  %1200 = vmatpush1.bf16.msra.mxu1 %v1225_v9  ;;  %v1294_v53 = vld [vmem:[%s1742_s1 + $0xd4] ss:$8 sps:$4 sm:$0xff]   ;;  %v1297_v55 = vld [vmem:[%s1742_s1 + $0xd0] ss:$8 sps:$4 sm:$0xff]   ;;  %v1298_v56 = vld [vmem:[%s1742_s1 + $0x64] ss:$8 sps:$4 sm:$0xff]  }
  0x15   :  { %577 = vmatprep.subr.bf16.mxu0 %v1226_v10  ;;  %1185 = vmatprep.subr.bf16.mxu1 %v1226_v10  ;;  %v1300_v57 = vld [vmem:[%s1742_s1 + $0xe4] ss:$8 sps:$4 sm:$0xff]   ;;  %v1302_v58 = vld [vmem:[%s1742_s1 + $0x60] ss:$8 sps:$4 sm:$0xff]   ;;  %v1304_v60 = vld [vmem:[%s1742_s1 + $0x74] ss:$8 sps:$4 sm:$0xff]  }
  0x16   :  { %v1303_v59 = vld [vmem:[%s1742_s1 + $0xe0] ss:$8 sps:$4 sm:$0xff]   ;;  %v1306_v61 = vld [vmem:[%s1742_s1 + $0xf4] ss:$8 sps:$4 sm:$0xff]   ;;  %v1308_v62 = vld [vmem:[%s1742_s1 + $0x70] ss:$8 sps:$4 sm:$0xff]  }
  0x17   :  { %v1309_v63 = vld [vmem:[%s1742_s1 + $0xf0] ss:$8 sps:$4 sm:$0xff]   ;;  %v960_v1 = vshrl.u32 %v959_v0, 7  ;;  %v957_v3 = vld [vmem:[%s51_s9] sm:$0x3] }
  0x18   :  { %578 = vmatpush1.bf16.msra.mxu0 %v1228_v11  ;;  %1201 = vmatpush1.bf16.msra.mxu1 %v1228_v11 }
  0x19   :  { %579 = vmatprep.subr.bf16.mxu0 %v1229_v12  ;;  %1186 = vmatprep.subr.bf16.mxu1 %v1229_v12  ;;  %v961_v2 = vsub.s32 0, %v960_v1  ;;  %v965_v4 = vsub.s32 1, %v960_v1 }
  0x1b   :  { %v1481_v5 = vrot.slane %v957_v3, %v961_v2  ;;  %v1483_v8 = vrot.slane %v957_v3, %v965_v4 }
  0x1c   :  { %580 = vmatpush1.bf16.msra.mxu0 %v1231_v13  ;;  %1202 = vmatpush1.bf16.msra.mxu1 %v1231_v13 }
  0x1d   :  { %581 = vmatprep.subr.bf16.mxu0 %v1232_v14  ;;  %1187 = vmatprep.subr.bf16.mxu1 %v1232_v14 }
  0x20   :  { %582 = vmatpush1.bf16.msra.mxu0 %v1234_v15  ;;  %1203 = vmatpush1.bf16.msra.mxu1 %v1234_v15 }
  0x21   :  { %583 = vmatprep.subr.bf16.mxu0 %v1235_v16  ;;  %1188 = vmatprep.subr.bf16.mxu1 %v1235_v16 }
  0x24   :  { %584 = vmatpush1.bf16.msra.mxu0 %v1237_v17  ;;  %1204 = vmatpush1.bf16.msra.mxu1 %v1237_v17 }
  0x25   :  { %585 = vmatprep.subr.bf16.mxu0 %v1238_v18  ;;  %1189 = vmatprep.subr.bf16.mxu1 %v1238_v18 }
  0x28   :  { %586 = vmatpush1.bf16.msra.mxu0 %v1240_v19  ;;  %1205 = vmatpush1.bf16.msra.mxu1 %v1240_v19 }
  0x29   :  { %587 = vmatprep.subr.bf16.mxu0 %v1241_v20  ;;  %1190 = vmatprep.subr.bf16.mxu1 %v1241_v20 }
  0x2c   :  { %588 = vmatpush1.bf16.msra.mxu0 %v1243_v21  ;;  %1206 = vmatpush1.bf16.msra.mxu1 %v1243_v21 }
  0x2d   :  { %589 = vmatprep.subr.bf16.mxu0 %v1244_v22  ;;  %1191 = vmatprep.subr.bf16.mxu1 %v1244_v22 }
  0x30   :  { %590 = vmatpush1.bf16.msra.mxu0 %v1246_v23  ;;  %1207 = vmatpush1.bf16.msra.mxu1 %v1246_v23 }
  0x31   :  { %591 = vmatprep.subr.bf16.mxu0 %v1247_v24  ;;  %1192 = vmatprep.subr.bf16.mxu1 %v1247_v24 }
  0x34   :  { %592 = vmatpush1.bf16.msra.mxu0 %v1249_v25  ;;  %1208 = vmatpush1.bf16.msra.mxu1 %v1249_v25 }
  0x35   :  { %593 = vmatprep.subr.bf16.mxu0 %v1250_v26  ;;  %1193 = vmatprep.subr.bf16.mxu1 %v1250_v26 }
  0x38   :  { %594 = vmatpush1.bf16.msra.mxu0 %v1252_v27  ;;  %1209 = vmatpush1.bf16.msra.mxu1 %v1252_v27 }
  0x39   :  { %595 = vmatprep.subr.bf16.mxu0 %v1253_v28  ;;  %1194 = vmatprep.subr.bf16.mxu1 %v1253_v28 }
  0x3c   :  { %596 = vmatpush1.bf16.msra.mxu0 %v1255_v29  ;;  %1210 = vmatpush1.bf16.msra.mxu1 %v1255_v29 }
  0x3d   :  { %597 = vmatprep.subr.bf16.mxu0 %v1256_v30  ;;  %1195 = vmatprep.subr.bf16.mxu1 %v1256_v30 }
  0x40   :  { %598 = vmatpush1.bf16.msra.mxu0 %v1258_v31  ;;  %1211 = vmatpush1.bf16.msra.mxu1 %v1258_v31 }
  0x41   :  { %599 = vmatprep.subr.bf16.mxu0 %v1259_v32  ;;  %1196 = vmatprep.subr.bf16.mxu1 %v1259_v32 }
  0x44   :  { %600 = vmatpush1.bf16.msra.mxu0 %v1261_v33  ;;  %1212 = vmatpush1.bf16.msra.mxu1 %v1261_v33 }
  0x47   :  { %602 = vmatmul.mubr.bf16.vlgmr.msra.gmra.mrb[0].mxu0 %v1262_v34  ;;  %682 = vmatmul.mubr.bf16.vlgmr.msra.gmra.mrb[0].mxu1 %v1265_v35 }
  0x48   :  { %611 = vmatprep.mubr.bf16.mxu0 %v1268_v36  ;;  %691 = vmatprep.mubr.bf16.mxu1 %v1270_v37 }
  0x4f   :  { %612 = vmatmul.mubr.bf16.gmra.mrb[4].mxu0 %v1272_v38  ;;  %692 = vmatmul.mubr.bf16.gmra.mrb[4].mxu1 %v1273_v39 }
  0x50   :  { %621 = vmatprep.mubr.bf16.mxu0 %v1274_v40  ;;  %701 = vmatprep.mubr.bf16.mxu1 %v1276_v41 }
  0x57   :  { %622 = vmatmul.mubr.bf16.gmra.mrb[8].mxu0 %v1278_v42  ;;  %702 = vmatmul.mubr.bf16.gmra.mrb[8].mxu1 %v1279_v43 }
  0x58   :  { %631 = vmatprep.mubr.bf16.mxu0 %v1280_v44  ;;  %711 = vmatprep.mubr.bf16.mxu1 %v1282_v45 }
  0x5f   :  { %632 = vmatmul.mubr.bf16.gmra.mrb[12].mxu0 %v1284_v46  ;;  %712 = vmatmul.mubr.bf16.gmra.mrb[12].mxu1 %v1285_v47 }
  0x60   :  { %641 = vmatprep.mubr.bf16.mxu0 %v1286_v48  ;;  %721 = vmatprep.mubr.bf16.mxu1 %v1288_v49 }
  0x67   :  { %642 = vmatmul.mubr.bf16.gmra.mrb[16].mxu0 %v1290_v50  ;;  %722 = vmatmul.mubr.bf16.gmra.mrb[16].mxu1 %v1291_v51 }
  0x68   :  { %651 = vmatprep.mubr.bf16.mxu0 %v1292_v52  ;;  %731 = vmatprep.mubr.bf16.mxu1 %v1294_v53 }
  0x6f   :  { %652 = vmatmul.mubr.bf16.gmra.mrb[20].mxu0 %v1296_v54  ;;  %732 = vmatmul.mubr.bf16.gmra.mrb[20].mxu1 %v1297_v55 }
  0x70   :  { %661 = vmatprep.mubr.bf16.mxu0 %v1298_v56  ;;  %741 = vmatprep.mubr.bf16.mxu1 %v1300_v57 }
  0x77   :  { %662 = vmatmul.mubr.bf16.gmra.mrb[24].mxu0 %v1302_v58  ;;  %742 = vmatmul.mubr.bf16.gmra.mrb[24].mxu1 %v1303_v59 }
  0x78   :  { %671 = vmatprep.mubr.bf16.mxu0 %v1304_v60  ;;  %751 = vmatprep.mubr.bf16.mxu1 %v1306_v61 }
  0x7f   :  { %672 = vmatmul.mubr.bf16.gmra.mrb[28].mxu0 %v1308_v62  ;;  %752 = vmatmul.mubr.bf16.gmra.mrb[28].mxu1 %v1309_v63 }
 0x11a   :  { %v603_v6 = vpop.f32.mrb[0].mxu0  ;;  %v683_v7 = vpop.f32.mrb[0].mxu1 }
 0x11b   :  { %v605_v9 = vpop.f32.mrb[1].mxu0  ;;  %v685_v10 = vpop.f32.mrb[1].mxu1  ;;  %v969_v13 = vadd.f32 %v1481_v5, %v603_v6  ;;  %v1001_v14 = vadd.f32 %v1481_v5, %v683_v7 }
 0x11c   :  { %v607_v11 = vpop.f32.mrb[2].mxu0  ;;  %v687_v12 = vpop.f32.mrb[2].mxu1  ;;  %v970_v17 = vadd.f32 %v1483_v8, %v605_v9  ;;  %v1002_v18 = vadd.f32 %v1483_v8, %v685_v10 }
 0x11d   :  { %v609_v15 = vpop.f32.mrb[3].mxu0  ;;  %v689_v16 = vpop.f32.mrb[3].mxu1  ;;  %1033 = vst [vmem:[%s1745_s4] sm:$0xff] %v969_v13  ;;  %1065 = vst [vmem:[%s1745_s4 + $0x100] sm:$0xff] %v1001_v14  ;;  %v971_v19 = vadd.f32 %v1481_v5, %v607_v11  ;;  %v1003_v20 = vadd.f32 %v1481_v5, %v687_v12 }
 0x11e   :  { %1034 = vst [vmem:[%s1745_s4 + $0x8] sm:$0xff] %v970_v17  ;;  %1066 = vst [vmem:[%s1745_s4 + $0x108] sm:$0xff] %v1002_v18  ;;  %v972_v21 = vadd.f32 %v1483_v8, %v609_v15  ;;  %v1004_v22 = vadd.f32 %v1483_v8, %v689_v16 }
 0x11f   :  { %1035 = vst [vmem:[%s1745_s4 + $0x10] sm:$0xff] %v971_v19  ;;  %1067 = vst [vmem:[%s1745_s4 + $0x110] sm:$0xff] %v1003_v20 }
 0x120   :  { %1036 = vst [vmem:[%s1745_s4 + $0x18] sm:$0xff] %v972_v21  ;;  %1068 = vst [vmem:[%s1745_s4 + $0x118] sm:$0xff] %v1004_v22 }
 0x122   :  { %v613_v23 = vpop.f32.mrb[4].mxu0  ;;  %v693_v24 = vpop.f32.mrb[4].mxu1 }
 0x123   :  { %v615_v25 = vpop.f32.mrb[5].mxu0  ;;  %v695_v26 = vpop.f32.mrb[5].mxu1  ;;  %v973_v29 = vadd.f32 %v1481_v5, %v613_v23  ;;  %v1005_v30 = vadd.f32 %v1481_v5, %v693_v24 }
 0x124   :  { %v617_v27 = vpop.f32.mrb[6].mxu0  ;;  %v697_v28 = vpop.f32.mrb[6].mxu1  ;;  %v974_v33 = vadd.f32 %v1483_v8, %v615_v25  ;;  %v1006_v34 = vadd.f32 %v1483_v8, %v695_v26 }
 0x125   :  { %v619_v31 = vpop.f32.mrb[7].mxu0  ;;  %v699_v32 = vpop.f32.mrb[7].mxu1  ;;  %1037 = vst [vmem:[%s1745_s4 + $0x20] sm:$0xff] %v973_v29  ;;  %1069 = vst [vmem:[%s1745_s4 + $0x120] sm:$0xff] %v1005_v30  ;;  %v975_v35 = vadd.f32 %v1481_v5, %v617_v27  ;;  %v1007_v36 = vadd.f32 %v1481_v5, %v697_v28 }
 0x126   :  { %1038 = vst [vmem:[%s1745_s4 + $0x28] sm:$0xff] %v974_v33  ;;  %1070 = vst [vmem:[%s1745_s4 + $0x128] sm:$0xff] %v1006_v34  ;;  %v976_v37 = vadd.f32 %v1483_v8, %v619_v31  ;;  %v1008_v38 = vadd.f32 %v1483_v8, %v699_v32 }
 0x127   :  { %1039 = vst [vmem:[%s1745_s4 + $0x30] sm:$0xff] %v975_v35  ;;  %1071 = vst [vmem:[%s1745_s4 + $0x130] sm:$0xff] %v1007_v36 }
 0x128   :  { %1040 = vst [vmem:[%s1745_s4 + $0x38] sm:$0xff] %v976_v37  ;;  %1072 = vst [vmem:[%s1745_s4 + $0x138] sm:$0xff] %v1008_v38 }
 0x12a   :  { %v623_v39 = vpop.f32.mrb[8].mxu0  ;;  %v703_v40 = vpop.f32.mrb[8].mxu1 }
 0x12b   :  { %v625_v41 = vpop.f32.mrb[9].mxu0  ;;  %v705_v42 = vpop.f32.mrb[9].mxu1  ;;  %v977_v45 = vadd.f32 %v1481_v5, %v623_v39  ;;  %v1009_v46 = vadd.f32 %v1481_v5, %v703_v40 }
 0x12c   :  { %v627_v43 = vpop.f32.mrb[10].mxu0  ;;  %v707_v44 = vpop.f32.mrb[10].mxu1  ;;  %v978_v49 = vadd.f32 %v1483_v8, %v625_v41  ;;  %v1010_v50 = vadd.f32 %v1483_v8, %v705_v42 }
 0x12d   :  { %v629_v47 = vpop.f32.mrb[11].mxu0  ;;  %v709_v48 = vpop.f32.mrb[11].mxu1  ;;  %1041 = vst [vmem:[%s1745_s4 + $0x40] sm:$0xff] %v977_v45  ;;  %1073 = vst [vmem:[%s1745_s4 + $0x140] sm:$0xff] %v1009_v46  ;;  %v979_v51 = vadd.f32 %v1481_v5, %v627_v43  ;;  %v1011_v52 = vadd.f32 %v1481_v5, %v707_v44 }
 0x12e   :  { %1042 = vst [vmem:[%s1745_s4 + $0x48] sm:$0xff] %v978_v49  ;;  %1074 = vst [vmem:[%s1745_s4 + $0x148] sm:$0xff] %v1010_v50  ;;  %v980_v53 = vadd.f32 %v1483_v8, %v629_v47  ;;  %v1012_v54 = vadd.f32 %v1483_v8, %v709_v48 }
 0x12f   :  { %1043 = vst [vmem:[%s1745_s4 + $0x50] sm:$0xff] %v979_v51  ;;  %1075 = vst [vmem:[%s1745_s4 + $0x150] sm:$0xff] %v1011_v52 }
 0x130   :  { %1044 = vst [vmem:[%s1745_s4 + $0x58] sm:$0xff] %v980_v53  ;;  %1076 = vst [vmem:[%s1745_s4 + $0x158] sm:$0xff] %v1012_v54 }
 0x132   :  { %v633_v55 = vpop.f32.mrb[12].mxu0  ;;  %v713_v56 = vpop.f32.mrb[12].mxu1 }
 0x133   :  { %v635_v57 = vpop.f32.mrb[13].mxu0  ;;  %v715_v58 = vpop.f32.mrb[13].mxu1  ;;  %v981_v61 = vadd.f32 %v1481_v5, %v633_v55  ;;  %v1013_v62 = vadd.f32 %v1481_v5, %v713_v56 }
 0x134   :  { %v637_v59 = vpop.f32.mrb[14].mxu0  ;;  %v717_v60 = vpop.f32.mrb[14].mxu1  ;;  %v982_v1 = vadd.f32 %v1483_v8, %v635_v57  ;;  %v1014_v2 = vadd.f32 %v1483_v8, %v715_v58 }
 0x135   :  { %v639_v63 = vpop.f32.mrb[15].mxu0  ;;  %v719_v0 = vpop.f32.mrb[15].mxu1  ;;  %1045 = vst [vmem:[%s1745_s4 + $0x60] sm:$0xff] %v981_v61  ;;  %1077 = vst [vmem:[%s1745_s4 + $0x160] sm:$0xff] %v1013_v62  ;;  %v983_v3 = vadd.f32 %v1481_v5, %v637_v59  ;;  %v1015_v4 = vadd.f32 %v1481_v5, %v717_v60 }
 0x136   :  { %1046 = vst [vmem:[%s1745_s4 + $0x68] sm:$0xff] %v982_v1  ;;  %1078 = vst [vmem:[%s1745_s4 + $0x168] sm:$0xff] %v1014_v2  ;;  %v984_v6 = vadd.f32 %v1483_v8, %v639_v63  ;;  %v1016_v7 = vadd.f32 %v1483_v8, %v719_v0 }
 0x137   :  { %1047 = vst [vmem:[%s1745_s4 + $0x70] sm:$0xff] %v983_v3  ;;  %1079 = vst [vmem:[%s1745_s4 + $0x170] sm:$0xff] %v1015_v4 }
 0x138   :  { %1048 = vst [vmem:[%s1745_s4 + $0x78] sm:$0xff] %v984_v6  ;;  %1080 = vst [vmem:[%s1745_s4 + $0x178] sm:$0xff] %v1016_v7 }
 0x13a   :  { %v643_v9 = vpop.f32.mrb[16].mxu0  ;;  %v723_v10 = vpop.f32.mrb[16].mxu1 }
 0x13b   :  { %v645_v11 = vpop.f32.mrb[17].mxu0  ;;  %v725_v12 = vpop.f32.mrb[17].mxu1  ;;  %v985_v15 = vadd.f32 %v1481_v5, %v643_v9  ;;  %v1017_v16 = vadd.f32 %v1481_v5, %v723_v10 }
 0x13c   :  { %v647_v13 = vpop.f32.mrb[18].mxu0  ;;  %v727_v14 = vpop.f32.mrb[18].mxu1  ;;  %v986_v19 = vadd.f32 %v1483_v8, %v645_v11  ;;  %v1018_v20 = vadd.f32 %v1483_v8, %v725_v12 }
 0x13d   :  { %v649_v17 = vpop.f32.mrb[19].mxu0  ;;  %v729_v18 = vpop.f32.mrb[19].mxu1  ;;  %1049 = vst [vmem:[%s1745_s4 + $0x80] sm:$0xff] %v985_v15  ;;  %1081 = vst [vmem:[%s1745_s4 + $0x180] sm:$0xff] %v1017_v16  ;;  %v987_v21 = vadd.f32 %v1481_v5, %v647_v13  ;;  %v1019_v22 = vadd.f32 %v1481_v5, %v727_v14 }
 0x13e   :  { %1050 = vst [vmem:[%s1745_s4 + $0x88] sm:$0xff] %v986_v19  ;;  %1082 = vst [vmem:[%s1745_s4 + $0x188] sm:$0xff] %v1018_v20  ;;  %v988_v23 = vadd.f32 %v1483_v8, %v649_v17  ;;  %v1020_v24 = vadd.f32 %v1483_v8, %v729_v18 }
 0x13f   :  { %1051 = vst [vmem:[%s1745_s4 + $0x90] sm:$0xff] %v987_v21  ;;  %1083 = vst [vmem:[%s1745_s4 + $0x190] sm:$0xff] %v1019_v22 }
 0x140   :  { %1052 = vst [vmem:[%s1745_s4 + $0x98] sm:$0xff] %v988_v23  ;;  %1084 = vst [vmem:[%s1745_s4 + $0x198] sm:$0xff] %v1020_v24 }
 0x142   :  { %v653_v25 = vpop.f32.mrb[20].mxu0  ;;  %v733_v26 = vpop.f32.mrb[20].mxu1 }
 0x143   :  { %v655_v27 = vpop.f32.mrb[21].mxu0  ;;  %v735_v28 = vpop.f32.mrb[21].mxu1  ;;  %v989_v31 = vadd.f32 %v1481_v5, %v653_v25  ;;  %v1021_v32 = vadd.f32 %v1481_v5, %v733_v26 }
 0x144   :  { %v657_v29 = vpop.f32.mrb[22].mxu0  ;;  %v737_v30 = vpop.f32.mrb[22].mxu1  ;;  %v990_v35 = vadd.f32 %v1483_v8, %v655_v27  ;;  %v1022_v36 = vadd.f32 %v1483_v8, %v735_v28 }
 0x145   :  { %v659_v33 = vpop.f32.mrb[23].mxu0  ;;  %v739_v34 = vpop.f32.mrb[23].mxu1  ;;  %1053 = vst [vmem:[%s1745_s4 + $0xa0] sm:$0xff] %v989_v31  ;;  %1085 = vst [vmem:[%s1745_s4 + $0x1a0] sm:$0xff] %v1021_v32  ;;  %v991_v37 = vadd.f32 %v1481_v5, %v657_v29  ;;  %v1023_v38 = vadd.f32 %v1481_v5, %v737_v30 }
 0x146   :  { %1054 = vst [vmem:[%s1745_s4 + $0xa8] sm:$0xff] %v990_v35  ;;  %1086 = vst [vmem:[%s1745_s4 + $0x1a8] sm:$0xff] %v1022_v36  ;;  %v992_v39 = vadd.f32 %v1483_v8, %v659_v33  ;;  %v1024_v40 = vadd.f32 %v1483_v8, %v739_v34 }
 0x147   :  { %1055 = vst [vmem:[%s1745_s4 + $0xb0] sm:$0xff] %v991_v37  ;;  %1087 = vst [vmem:[%s1745_s4 + $0x1b0] sm:$0xff] %v1023_v38 }
 0x148   :  { %1056 = vst [vmem:[%s1745_s4 + $0xb8] sm:$0xff] %v992_v39  ;;  %1088 = vst [vmem:[%s1745_s4 + $0x1b8] sm:$0xff] %v1024_v40 }
 0x14a   :  { %v663_v41 = vpop.f32.mrb[24].mxu0  ;;  %v743_v42 = vpop.f32.mrb[24].mxu1 }
 0x14b   :  { %v665_v43 = vpop.f32.mrb[25].mxu0  ;;  %v745_v44 = vpop.f32.mrb[25].mxu1  ;;  %v993_v47 = vadd.f32 %v1481_v5, %v663_v41  ;;  %v1025_v48 = vadd.f32 %v1481_v5, %v743_v42 }
 0x14c   :  { %v667_v45 = vpop.f32.mrb[26].mxu0  ;;  %v747_v46 = vpop.f32.mrb[26].mxu1  ;;  %v994_v51 = vadd.f32 %v1483_v8, %v665_v43  ;;  %v1026_v52 = vadd.f32 %v1483_v8, %v745_v44 }
 0x14d   :  { %v669_v49 = vpop.f32.mrb[27].mxu0  ;;  %v749_v50 = vpop.f32.mrb[27].mxu1  ;;  %1057 = vst [vmem:[%s1745_s4 + $0xc0] sm:$0xff] %v993_v47  ;;  %1089 = vst [vmem:[%s1745_s4 + $0x1c0] sm:$0xff] %v1025_v48  ;;  %v995_v53 = vadd.f32 %v1481_v5, %v667_v45  ;;  %v1027_v54 = vadd.f32 %v1481_v5, %v747_v46 }
 0x14e   :  { %1058 = vst [vmem:[%s1745_s4 + $0xc8] sm:$0xff] %v994_v51  ;;  %1090 = vst [vmem:[%s1745_s4 + $0x1c8] sm:$0xff] %v1026_v52  ;;  %v996_v55 = vadd.f32 %v1483_v8, %v669_v49  ;;  %v1028_v56 = vadd.f32 %v1483_v8, %v749_v50 }
 0x14f   :  { %1059 = vst [vmem:[%s1745_s4 + $0xd0] sm:$0xff] %v995_v53  ;;  %1091 = vst [vmem:[%s1745_s4 + $0x1d0] sm:$0xff] %v1027_v54 }
 0x150   :  { %1060 = vst [vmem:[%s1745_s4 + $0xd8] sm:$0xff] %v996_v55  ;;  %1092 = vst [vmem:[%s1745_s4 + $0x1d8] sm:$0xff] %v1028_v56 }
 0x152   :  { %v673_v57 = vpop.f32.mrb[28].mxu0  ;;  %v753_v58 = vpop.f32.mrb[28].mxu1 }
 0x153   :  { %v675_v59 = vpop.f32.mrb[29].mxu0  ;;  %v755_v60 = vpop.f32.mrb[29].mxu1  ;;  %v997_v63 = vadd.f32 %v1481_v5, %v673_v57  ;;  %v1029_v0 = vadd.f32 %v1481_v5, %v753_v58 }
 0x154   :  { %v677_v61 = vpop.f32.mrb[30].mxu0  ;;  %v757_v62 = vpop.f32.mrb[30].mxu1  ;;  %v998_v3 = vadd.f32 %v1483_v8, %v675_v59  ;;  %v1030_v4 = vadd.f32 %v1483_v8, %v755_v60 }
 0x155   :  { %v679_v1 = vpop.f32.mrb[31].mxu0  ;;  %v759_v2 = vpop.f32.mrb[31].mxu1  ;;  %1061 = vst [vmem:[%s1745_s4 + $0xe0] sm:$0xff] %v997_v63  ;;  %1093 = vst [vmem:[%s1745_s4 + $0x1e0] sm:$0xff] %v1029_v0  ;;  %v999_v6 = vadd.f32 %v1481_v5, %v677_v61  ;;  %v1031_v7 = vadd.f32 %v1481_v5, %v757_v62 }
 0x156   :  { %1062 = vst [vmem:[%s1745_s4 + $0xe8] sm:$0xff] %v998_v3  ;;  %1094 = vst [vmem:[%s1745_s4 + $0x1e8] sm:$0xff] %v1030_v4  ;;  %v1000_v9 = vadd.f32 %v1483_v8, %v679_v1  ;;  %v1032_v10 = vadd.f32 %v1483_v8, %v759_v2 }
 0x157   :  { %1063 = vst [vmem:[%s1745_s4 + $0xf0] sm:$0xff] %v999_v6  ;;  %1095 = vst [vmem:[%s1745_s4 + $0x1f0] sm:$0xff] %v1031_v7 }
 0x158   :  { %1064 = vst [vmem:[%s1745_s4 + $0xf8] sm:$0xff] %v1000_v9  ;;  %1096 = vst [vmem:[%s1745_s4 + $0x1f8] sm:$0xff] %v1032_v10 }

</bundles_post_ra>
